<compile_context>
chip_gen: v5e
topology: v5e:2x2
jax: 0.10.0
libtpu: 0.0.40
codegen_flags: <defaults>
</compile_context>

<pallas_src>
import functools

import jax
import jax.numpy as jnp
from jax.experimental import pallas as pl
from jax.experimental.pallas import tpu as pltpu


def _self_attn_kernel(x_ref, pos_ref, wqk_ref, bqk_ref, wv_ref, bv_ref,
                      wo_ref, bo_ref, g_ref, b_ref, out_ref, *, nhead):
    """One batch element per grid step: fused QK/V projection + MHA + LayerNorm.

    x_ref / pos_ref / out_ref are (L, E) blocks (batch dim squeezed by the
    BlockSpec).  Weight refs use constant index maps, so they stay
    VMEM-resident across grid steps.
    """
    L, E = x_ref.shape
    H = nhead
    Dh = E // H
    f32 = jnp.float32
    mm_dt = wqk_ref.dtype                  # bf16 on the fast path, f32 otherwise
    c = lambda a: a.astype(mm_dt)          # MXU-input cast; accumulation is f32

    x = x_ref[...].astype(f32)             # (L, E)  value / residual rows
    qk_in = x + pos_ref[...].astype(f32)   # (L, E)  query & key rows

    # ---- in-projection: weights arrive pre-transposed (and Wq pre-scaled by
    # 1/sqrt(Dh)); Q and K fused into a single MXU pass with a 2E-wide RHS. ----
    qk = jnp.dot(c(qk_in), wqk_ref[...],
                 preferred_element_type=f32) + bqk_ref[...]        # (L, 2E)
    v = jnp.dot(c(x), wv_ref[...],
                preferred_element_type=f32) + bv_ref[...]          # (L, E)

    # ---- head-leading (H, L, Dh) layout: lane-split reshape + one
    # leading-axes transpose per tensor (lane dim untouched). ----
    def heads(t):                           # (L, E) -> (H, L, Dh)
        return jnp.transpose(t.reshape(L, H, Dh), (1, 0, 2))

    qh = heads(qk[:, :E])                   # already scaled via Wq
    kh = heads(qk[:, E:])
    vh = heads(v)

    # ---- per-head scaled-dot-product attention, all heads batched.  No mask:
    # each grid step holds exactly one batch element. ----
    s = jnp.einsum("hqd,hkd->hqk", c(qh), c(kh),
                   preferred_element_type=f32)                     # (H, L, L)
    s = s - jnp.max(s, axis=-1, keepdims=True)
    p = jnp.exp(s)
    p = p * pl.reciprocal(jnp.sum(p, axis=-1, keepdims=True), approx=True)

    o = jnp.einsum("hqk,hkd->hqd", c(p), c(vh),
                   preferred_element_type=f32)                     # (H, L, Dh)

    # ---- head-space out-projection: `o` is consumed per head and never
    # relaid out back to an (L, E) slab. ----
    tgt2 = jnp.dot(c(o[0]), wo_ref[0], preferred_element_type=f32)
    for h in range(1, H):
        tgt2 = tgt2 + jnp.dot(c(o[h]), wo_ref[h], preferred_element_type=f32)
    tgt2 = tgt2 + bo_ref[...]                                      # (L, E)

    # ---- residual + LayerNorm (eps=1e-5, biased variance, affine) ----
    y = x + tgt2
    mu = jnp.mean(y, axis=-1, keepdims=True)
    yc = y - mu
    var = jnp.mean(yc * yc, axis=-1, keepdims=True)
    out = yc * jax.lax.rsqrt(var + 1e-5) * g_ref[...] + b_ref[...]
    out_ref[...] = out.astype(out_ref.dtype)


def prepare_params(params, *, nhead, use_bf16_matmul=True):
    """One-time weight prep (hoisted out of the per-call path).

    Pre-transposes the projection weights, folds the 1/sqrt(Dh) query scale
    into Wq / bq, reshapes Wo^T per head, and (optionally) casts the matmul
    weights to bf16 (MXU inputs; accumulation stays f32 inside the kernel).

    params: raw PyTorch-layout parameters
      (in_proj_weight (3E,E), in_proj_bias (3E,),
       out_proj_weight (E,E), out_proj_bias (E,),
       norm_weight (E,), norm_bias (E,)).
    """
    wqkv, bqkv, wo, bo, gamma, beta = params
    E = wo.shape[0]
    assert E % nhead == 0, "d_model must be divisible by nhead"
    Dh = E // nhead
    scale = 1.0 / (Dh ** 0.5)
    w_dt = jnp.bfloat16 if use_bf16_matmul else jnp.float32

    wq, wk, wv = wqkv[:E], wqkv[E:2 * E], wqkv[2 * E:]
    wqk_t = jnp.concatenate([wq.T * scale, wk.T], axis=1).astype(w_dt)  # (E, 2E)
    wv_t = wv.T.astype(w_dt)                                            # (E, E)
    wo_h = wo.T.reshape(nhead, Dh, E).astype(w_dt)                      # (H, Dh, E)

    bqk = jnp.concatenate([bqkv[:E] * scale, bqkv[E:2 * E]])[None].astype(jnp.float32)
    bv = bqkv[2 * E:][None].astype(jnp.float32)
    bo2 = bo[None].astype(jnp.float32)
    g2 = gamma[None].astype(jnp.float32)
    b2 = beta[None].astype(jnp.float32)
    return (wqk_t, bqk, wv_t, bv, wo_h, bo2, g2, b2)


def _vmem_limit_bytes(L, E, H, w_bytes):
    """Per-step VMEM budget derived from actual tile sizes (+2x margin)."""
    weights = 4 * E * E * w_bytes + 6 * E * 4          # resident projection weights
    act_io = (2 * 2 + 2) * L * E * 4                   # x, pos (double-buffered) + out
    interm = (3 * L * E                                # qk, v
              + 3 * L * E                              # qh/kh/vh
              + 2 * H * L * L                          # scores + probabilities
              + 3 * L * E) * 4                         # o, tgt2, y
    est = weights + act_io + interm
    # Clamp to a range that is legal on v5e/v6e (128 MiB) and v7x (64 MiB).
    return int(min(max(2 * est, 16 * 2 ** 20), 64 * 2 ** 20))


def self_attention_layer(tgt_lne, query_pos_lne, prepared_params, *, nhead):
    """SelfAttentionLayer.forward (post-norm, standard MHA, dropout=0, no masks).

    tgt_lne, query_pos_lne: (L, N, E) float32 (PyTorch sequence-first layout).
    prepared_params: output of prepare_params().
    """
    L, N, E = tgt_lne.shape
    wqk_t, bqk, wv_t, bv, wo_h, bo2, g2, b2 = prepared_params
    H, Dh, _ = wo_h.shape
    assert H == nhead and H * Dh == E

    # Batch-leading layout so every Pallas block has its last two dims equal to
    # the full (L, E) array dims (always tile-legal DMAs).  The (L,N,E)->(N,L,E)
    # relayout is a single small XLA copy outside the kernel (<< weight traffic).
    # TODO(synk): switch to strided (L, 1, E) blocks on the untransposed array
    # once that block shape is verified to lower on the target jax version.
    x_nle = jnp.transpose(tgt_lne, (1, 0, 2))
    pos_nle = jnp.transpose(query_pos_lne, (1, 0, 2))

    kernel = functools.partial(_self_attn_kernel, nhead=H)
    row_blk = pl.BlockSpec((None, L, E), lambda n: (n, 0, 0))
    const2 = lambda n: (0, 0)
    const3 = lambda n: (0, 0, 0)

    out_nle = pl.pallas_call(
        kernel,
        out_shape=jax.ShapeDtypeStruct((N, L, E), tgt_lne.dtype),
        grid=(N,),
        in_specs=[
            row_blk,                                   # tgt rows (one batch elem)
            row_blk,                                   # query_pos rows
            pl.BlockSpec((E, 2 * E), const2),          # [Wq^T * scale | Wk^T]
            pl.BlockSpec((1, 2 * E), const2),          # [bq * scale | bk]
            pl.BlockSpec((E, E), const2),              # Wv^T
            pl.BlockSpec((1, E), const2),              # bv
            pl.BlockSpec((H, Dh, E), const3),          # Wo^T split per head
            pl.BlockSpec((1, E), const2),              # bo
            pl.BlockSpec((1, E), const2),              # LayerNorm weight
            pl.BlockSpec((1, E), const2),              # LayerNorm bias
        ],
        out_specs=row_blk,
        compiler_params=pltpu.CompilerParams(
            # Batch elements are independent -> megacore-shardable on v7x;
            # harmless on v5e/v6e (single TC).
            dimension_semantics=("parallel",),
            vmem_limit_bytes=_vmem_limit_bytes(L, E, H, wqk_t.dtype.itemsize)),
    )(x_nle, pos_nle, wqk_t, bqk, wv_t, bv, wo_h, bo2, g2, b2)

    return jnp.transpose(out_nle, (1, 0, 2))           # back to (L, N, E)


def _xavier_uniform(key, shape):
    fan_out, fan_in = shape[0], shape[1]
    bound = (6.0 / (fan_in + fan_out)) ** 0.5
    return jax.random.uniform(key, shape, jnp.float32, -bound, bound)


def _reference(tgt, pos, params, nhead):
    """Pure-JAX reference of the same forward pass (for a sanity check)."""
    wqkv, bqkv, wo, bo, gamma, beta = params
    L, N, E = tgt.shape
    Dh = E // nhead
    qk_in = tgt + pos
    q = qk_in @ wqkv[0:E].T + bqkv[0:E]
    k = qk_in @ wqkv[E:2 * E].T + bqkv[E:2 * E]
    v = tgt @ wqkv[2 * E:].T + bqkv[2 * E:]

    def split(x):
        return x.reshape(L, N, nhead, Dh).transpose(1, 2, 0, 3)

    qh, kh, vh = split(q), split(k), split(v)
    s = jnp.einsum("nhqd,nhkd->nhqk", qh, kh) / (Dh ** 0.5)
    p = jax.nn.softmax(s, axis=-1)
    o = jnp.einsum("nhqk,nhkd->nhqd", p, vh)
    o = o.transpose(2, 0, 1, 3).reshape(L, N, E)
    tgt2 = o @ wo.T + bo
    y = tgt + tgt2
    mu = jnp.mean(y, -1, keepdims=True)
    var = jnp.mean((y - mu) ** 2, -1, keepdims=True)
    return (y - mu) / jnp.sqrt(var + 1e-5) * gamma + beta


if __name__ == "__main__":
    L, N, E, H = 8, 2, 32, 4   # seq, batch, d_model, nhead

    key = jax.random.PRNGKey(0)
    k_tgt, k_pos, k_wqkv, k_wo = jax.random.split(key, 4)

    tgt = jax.random.normal(k_tgt, (L, N, E), jnp.float32)
    query_pos = jax.random.normal(k_pos, (L, N, E), jnp.float32)

    # Deterministic parameter init (xavier_uniform on >1-dim weights, zero
    # biases, LayerNorm affine = identity) — mirrors _reset_parameters.
    wqkv = _xavier_uniform(k_wqkv, (3 * E, E))     # in_proj_weight
    bqkv = jnp.zeros((3 * E,), jnp.float32)        # in_proj_bias
    wo = _xavier_uniform(k_wo, (E, E))             # out_proj.weight
    bo = jnp.zeros((E,), jnp.float32)              # out_proj.bias
    gamma = jnp.ones((E,), jnp.float32)            # norm.weight
    beta = jnp.zeros((E,), jnp.float32)            # norm.bias
    params = (wqkv, bqkv, wo, bo, gamma, beta)

    ref = _reference(tgt, query_pos, params, H)

    # Default fast path: bf16 MXU inputs, f32 accumulation.
    prep_bf16 = prepare_params(params, nhead=H, use_bf16_matmul=True)
    out = self_attention_layer(tgt, query_pos, prep_bf16, nhead=H)
    out = jax.block_until_ready(out)
    assert out.shape == (L, N, E)
    assert jnp.allclose(out, ref, atol=5e-2, rtol=5e-2), "bf16 path mismatch"

    # Exact f32 path (tolerance only covers the approximate EUP reciprocal).
    prep_f32 = prepare_params(params, nhead=H, use_bf16_matmul=False)
    out32 = self_attention_layer(tgt, query_pos, prep_f32, nhead=H)
    out32 = jax.block_until_ready(out32)
    assert jnp.allclose(out32, ref, atol=2e-3, rtol=2e-3), "f32 path mismatch"

    print("KERNEL_OK")
</pallas_src>

<mosaic_0001>
module attributes {stable_mosaic.version = 11 : i64} {
  func.func @_self_attn_kernel(%arg0: i32, %arg1: memref<1x8x32xf32, #tpu.memory_space<vmem>>, %arg2: memref<1x8x32xf32, #tpu.memory_space<vmem>>, %arg3: memref<32x64xbf16, #tpu.memory_space<vmem>>, %arg4: memref<1x64xf32, #tpu.memory_space<vmem>>, %arg5: memref<32x32xbf16, #tpu.memory_space<vmem>>, %arg6: memref<1x32xf32, #tpu.memory_space<vmem>>, %arg7: memref<4x8x32xbf16, #tpu.memory_space<vmem>>, %arg8: memref<1x32xf32, #tpu.memory_space<vmem>>, %arg9: memref<1x32xf32, #tpu.memory_space<vmem>>, %arg10: memref<1x32xf32, #tpu.memory_space<vmem>>, %arg11: memref<1x8x32xf32, #tpu.memory_space<vmem>>) attributes {dimension_semantics = [#tpu.dimension_semantics<parallel>], iteration_bounds = array<i64: 2>, scalar_prefetch = 0 : i64, scratch_operands = 0 : i64, tpu.core_type = #tpu.core_type<tc>, window_params = [{transform_indices = @transform_0, window_bounds = array<i64: 1, 8, 32>}, {transform_indices = @transform_1, window_bounds = array<i64: 1, 8, 32>}, {pipeline_mode = #tpu.pipeline_mode<synchronous>, transform_indices = @transform_2, window_bounds = array<i64: 32, 64>}, {pipeline_mode = #tpu.pipeline_mode<synchronous>, transform_indices = @transform_3, window_bounds = array<i64: 1, 64>}, {pipeline_mode = #tpu.pipeline_mode<synchronous>, transform_indices = @transform_4, window_bounds = array<i64: 32, 32>}, {pipeline_mode = #tpu.pipeline_mode<synchronous>, transform_indices = @transform_5, window_bounds = array<i64: 1, 32>}, {pipeline_mode = #tpu.pipeline_mode<synchronous>, transform_indices = @transform_6, window_bounds = array<i64: 4, 8, 32>}, {pipeline_mode = #tpu.pipeline_mode<synchronous>, transform_indices = @transform_7, window_bounds = array<i64: 1, 32>}, {pipeline_mode = #tpu.pipeline_mode<synchronous>, transform_indices = @transform_8, window_bounds = array<i64: 1, 32>}, {pipeline_mode = #tpu.pipeline_mode<synchronous>, transform_indices = @transform_9, window_bounds = array<i64: 1, 32>}, {transform_indices = @transform_10, window_bounds = array<i64: 1, 8, 32>}]} {
    %c0 = arith.constant 0 : index
    %c0_0 = arith.constant 0 : index
    %c0_1 = arith.constant 0 : index
    %0 = vector.load %arg1[%c0, %c0_0, %c0_1] : memref<1x8x32xf32, #tpu.memory_space<vmem>>, vector<1x8x32xf32>
    %1 = vector.shape_cast %0 : vector<1x8x32xf32> to vector<8x32xf32>
    %c0_2 = arith.constant 0 : index
    %c0_3 = arith.constant 0 : index
    %c0_4 = arith.constant 0 : index
    %2 = vector.load %arg2[%c0_2, %c0_3, %c0_4] : memref<1x8x32xf32, #tpu.memory_space<vmem>>, vector<1x8x32xf32>
    %3 = vector.shape_cast %2 : vector<1x8x32xf32> to vector<8x32xf32>
    %4 = arith.addf %1, %3 : vector<8x32xf32>
    %5 = arith.truncf %4 : vector<8x32xf32> to vector<8x32xbf16>
    %c0_5 = arith.constant 0 : index
    %c0_6 = arith.constant 0 : index
    %6 = vector.load %arg3[%c0_5, %c0_6] : memref<32x64xbf16, #tpu.memory_space<vmem>>, vector<32x64xbf16>
    %cst = arith.constant dense<0.000000e+00> : vector<8x64xf32>
    %7 = tpu.matmul %5, %6, %cst {dimension_numbers = #tpu.dot_dimension_numbers<[1], [0], [0], [1], [0, 0, 1, 1], [], []>} : vector<8x32xbf16>, vector<32x64xbf16>, vector<8x64xf32> -> vector<8x64xf32>
    %c0_7 = arith.constant 0 : index
    %c0_8 = arith.constant 0 : index
    %8 = vector.load %arg4[%c0_7, %c0_8] : memref<1x64xf32, #tpu.memory_space<vmem>>, vector<1x64xf32>
    %9 = vector.broadcast %8 : vector<1x64xf32> to vector<8x64xf32>
    %10 = arith.addf %7, %9 : vector<8x64xf32>
    %11 = arith.truncf %1 : vector<8x32xf32> to vector<8x32xbf16>
    %c0_9 = arith.constant 0 : index
    %c0_10 = arith.constant 0 : index
    %12 = vector.load %arg5[%c0_9, %c0_10] : memref<32x32xbf16, #tpu.memory_space<vmem>>, vector<32x32xbf16>
    %cst_11 = arith.constant dense<0.000000e+00> : vector<8x32xf32>
    %13 = tpu.matmul %11, %12, %cst_11 {dimension_numbers = #tpu.dot_dimension_numbers<[1], [0], [0], [1], [0, 0, 1, 1], [], []>} : vector<8x32xbf16>, vector<32x32xbf16>, vector<8x32xf32> -> vector<8x32xf32>
    %c0_12 = arith.constant 0 : index
    %c0_13 = arith.constant 0 : index
    %14 = vector.load %arg6[%c0_12, %c0_13] : memref<1x32xf32, #tpu.memory_space<vmem>>, vector<1x32xf32>
    %15 = vector.broadcast %14 : vector<1x32xf32> to vector<8x32xf32>
    %16 = arith.addf %13, %15 : vector<8x32xf32>
    %17 = vector.extract_strided_slice %10 {offsets = [0, 0], sizes = [8, 32], strides = [1, 1]} : vector<8x64xf32> to vector<8x32xf32>
    %18 = vector.shape_cast %17 : vector<8x32xf32> to vector<8x4x8xf32>
    %19 = tpu.transpose %18, [1, 0, 2] : vector<8x4x8xf32> -> vector<4x8x8xf32>
    %20 = vector.extract_strided_slice %10 {offsets = [0, 32], sizes = [8, 32], strides = [1, 1]} : vector<8x64xf32> to vector<8x32xf32>
    %21 = vector.shape_cast %20 : vector<8x32xf32> to vector<8x4x8xf32>
    %22 = tpu.transpose %21, [1, 0, 2] : vector<8x4x8xf32> -> vector<4x8x8xf32>
    %23 = vector.shape_cast %16 : vector<8x32xf32> to vector<8x4x8xf32>
    %24 = tpu.transpose %23, [1, 0, 2] : vector<8x4x8xf32> -> vector<4x8x8xf32>
    %25 = arith.truncf %19 : vector<4x8x8xf32> to vector<4x8x8xbf16>
    %26 = arith.truncf %22 : vector<4x8x8xf32> to vector<4x8x8xbf16>
    "tpu.trace_start"() <{level = 10 : i32, message = "hqd,hkd->hqk"}> : () -> ()
    %cst_14 = arith.constant dense<0.000000e+00> : vector<4x8x8xf32>
    %27 = tpu.matmul %25, %26, %cst_14 {dimension_numbers = #tpu.dot_dimension_numbers<[2], [2], [1], [1], [0, 0, 0, 1, 1, 1], [0], [0]>} : vector<4x8x8xbf16>, vector<4x8x8xbf16>, vector<4x8x8xf32> -> vector<4x8x8xf32>
    "tpu.trace_stop"() : () -> ()
    %cst_15 = arith.constant dense<0xFF800000> : vector<4x8xf32>
    %28 = vector.multi_reduction <maximumf>, %27, %cst_15 [2] : vector<4x8x8xf32> to vector<4x8xf32>
    %29 = vector.shape_cast %28 : vector<4x8xf32> to vector<4x8x1xf32>
    %30 = vector.broadcast %29 : vector<4x8x1xf32> to vector<4x8x8xf32>
    %31 = arith.subf %27, %30 : vector<4x8x8xf32>
    %32 = math.exp %31 : vector<4x8x8xf32>
    %cst_16 = arith.constant dense<0.000000e+00> : vector<4x8xf32>
    %33 = vector.multi_reduction <add>, %32, %cst_16 [2] : vector<4x8x8xf32> to vector<4x8xf32>
    %34 = vector.shape_cast %33 : vector<4x8xf32> to vector<4x8x1xf32>
    %35 = tpu.reciprocal %34 {approx = true} : vector<4x8x1xf32> -> vector<4x8x1xf32>
    %36 = vector.broadcast %35 : vector<4x8x1xf32> to vector<4x8x8xf32>
    %37 = arith.mulf %32, %36 : vector<4x8x8xf32>
    %38 = arith.truncf %37 : vector<4x8x8xf32> to vector<4x8x8xbf16>
    %39 = arith.truncf %24 : vector<4x8x8xf32> to vector<4x8x8xbf16>
    "tpu.trace_start"() <{level = 10 : i32, message = "hqk,hkd->hqd"}> : () -> ()
    %cst_17 = arith.constant dense<0.000000e+00> : vector<4x8x8xf32>
    %40 = tpu.matmul %38, %39, %cst_17 {dimension_numbers = #tpu.dot_dimension_numbers<[2], [1], [1], [2], [0, 0, 0, 1, 1, 2], [0], [0]>} : vector<4x8x8xbf16>, vector<4x8x8xbf16>, vector<4x8x8xf32> -> vector<4x8x8xf32>
    "tpu.trace_stop"() : () -> ()
    %41 = vector.extract_strided_slice %40 {offsets = [0, 0, 0], sizes = [1, 8, 8], strides = [1, 1, 1]} : vector<4x8x8xf32> to vector<1x8x8xf32>
    %42 = vector.shape_cast %41 : vector<1x8x8xf32> to vector<8x8xf32>
    %43 = arith.truncf %42 : vector<8x8xf32> to vector<8x8xbf16>
    %c0_18 = arith.constant 0 : index
    %c0_19 = arith.constant 0 : index
    %c0_20 = arith.constant 0 : index
    %44 = vector.load %arg7[%c0_18, %c0_19, %c0_20] : memref<4x8x32xbf16, #tpu.memory_space<vmem>>, vector<1x8x32xbf16>
    %45 = vector.shape_cast %44 : vector<1x8x32xbf16> to vector<8x32xbf16>
    %cst_21 = arith.constant dense<0.000000e+00> : vector<8x32xf32>
    %46 = tpu.matmul %43, %45, %cst_21 {dimension_numbers = #tpu.dot_dimension_numbers<[1], [0], [0], [1], [0, 0, 1, 1], [], []>} : vector<8x8xbf16>, vector<8x32xbf16>, vector<8x32xf32> -> vector<8x32xf32>
    %47 = vector.extract_strided_slice %40 {offsets = [1, 0, 0], sizes = [1, 8, 8], strides = [1, 1, 1]} : vector<4x8x8xf32> to vector<1x8x8xf32>
    %48 = vector.shape_cast %47 : vector<1x8x8xf32> to vector<8x8xf32>
    %49 = arith.truncf %48 : vector<8x8xf32> to vector<8x8xbf16>
    %c1 = arith.constant 1 : index
    %c0_22 = arith.constant 0 : index
    %c0_23 = arith.constant 0 : index
    %50 = vector.load %arg7[%c1, %c0_22, %c0_23] : memref<4x8x32xbf16, #tpu.memory_space<vmem>>, vector<1x8x32xbf16>
    %51 = vector.shape_cast %50 : vector<1x8x32xbf16> to vector<8x32xbf16>
    %cst_24 = arith.constant dense<0.000000e+00> : vector<8x32xf32>
    %52 = tpu.matmul %49, %51, %cst_24 {dimension_numbers = #tpu.dot_dimension_numbers<[1], [0], [0], [1], [0, 0, 1, 1], [], []>} : vector<8x8xbf16>, vector<8x32xbf16>, vector<8x32xf32> -> vector<8x32xf32>
    %53 = arith.addf %46, %52 : vector<8x32xf32>
    %54 = vector.extract_strided_slice %40 {offsets = [2, 0, 0], sizes = [1, 8, 8], strides = [1, 1, 1]} : vector<4x8x8xf32> to vector<1x8x8xf32>
    %55 = vector.shape_cast %54 : vector<1x8x8xf32> to vector<8x8xf32>
    %56 = arith.truncf %55 : vector<8x8xf32> to vector<8x8xbf16>
    %c2 = arith.constant 2 : index
    %c0_25 = arith.constant 0 : index
    %c0_26 = arith.constant 0 : index
    %57 = vector.load %arg7[%c2, %c0_25, %c0_26] : memref<4x8x32xbf16, #tpu.memory_space<vmem>>, vector<1x8x32xbf16>
    %58 = vector.shape_cast %57 : vector<1x8x32xbf16> to vector<8x32xbf16>
    %cst_27 = arith.constant dense<0.000000e+00> : vector<8x32xf32>
    %59 = tpu.matmul %56, %58, %cst_27 {dimension_numbers = #tpu.dot_dimension_numbers<[1], [0], [0], [1], [0, 0, 1, 1], [], []>} : vector<8x8xbf16>, vector<8x32xbf16>, vector<8x32xf32> -> vector<8x32xf32>
    %60 = arith.addf %53, %59 : vector<8x32xf32>
    %61 = vector.extract_strided_slice %40 {offsets = [3, 0, 0], sizes = [1, 8, 8], strides = [1, 1, 1]} : vector<4x8x8xf32> to vector<1x8x8xf32>
    %62 = vector.shape_cast %61 : vector<1x8x8xf32> to vector<8x8xf32>
    %63 = arith.truncf %62 : vector<8x8xf32> to vector<8x8xbf16>
    %c3 = arith.constant 3 : index
    %c0_28 = arith.constant 0 : index
    %c0_29 = arith.constant 0 : index
    %64 = vector.load %arg7[%c3, %c0_28, %c0_29] : memref<4x8x32xbf16, #tpu.memory_space<vmem>>, vector<1x8x32xbf16>
    %65 = vector.shape_cast %64 : vector<1x8x32xbf16> to vector<8x32xbf16>
    %cst_30 = arith.constant dense<0.000000e+00> : vector<8x32xf32>
    %66 = tpu.matmul %63, %65, %cst_30 {dimension_numbers = #tpu.dot_dimension_numbers<[1], [0], [0], [1], [0, 0, 1, 1], [], []>} : vector<8x8xbf16>, vector<8x32xbf16>, vector<8x32xf32> -> vector<8x32xf32>
    %67 = arith.addf %60, %66 : vector<8x32xf32>
    %c0_31 = arith.constant 0 : index
    %c0_32 = arith.constant 0 : index
    %68 = vector.load %arg8[%c0_31, %c0_32] : memref<1x32xf32, #tpu.memory_space<vmem>>, vector<1x32xf32>
    %69 = vector.broadcast %68 : vector<1x32xf32> to vector<8x32xf32>
    %70 = arith.addf %67, %69 : vector<8x32xf32>
    %71 = arith.addf %1, %70 : vector<8x32xf32>
    %cst_33 = arith.constant dense<0.000000e+00> : vector<8xf32>
    %72 = vector.multi_reduction <add>, %71, %cst_33 [1] : vector<8x32xf32> to vector<8xf32>
    %73 = vector.shape_cast %72 : vector<8xf32> to vector<8x1xf32>
    %cst_34 = arith.constant 3.200000e+01 : f32
    %74 = vector.broadcast %cst_34 : f32 to vector<8x1xf32>
    %75 = arith.divf %73, %74 : vector<8x1xf32>
    %76 = vector.broadcast %75 : vector<8x1xf32> to vector<8x32xf32>
    %77 = arith.subf %71, %76 : vector<8x32xf32>
    %78 = arith.mulf %77, %77 : vector<8x32xf32>
    %cst_35 = arith.constant dense<0.000000e+00> : vector<8xf32>
    %79 = vector.multi_reduction <add>, %78, %cst_35 [1] : vector<8x32xf32> to vector<8xf32>
    %80 = vector.shape_cast %79 : vector<8xf32> to vector<8x1xf32>
    %cst_36 = arith.constant 3.200000e+01 : f32
    %81 = vector.broadcast %cst_36 : f32 to vector<8x1xf32>
    %82 = arith.divf %80, %81 : vector<8x1xf32>
    %cst_37 = arith.constant 9.99999974E-6 : f32
    %83 = vector.broadcast %cst_37 : f32 to vector<8x1xf32>
    %84 = arith.addf %82, %83 : vector<8x1xf32>
    %85 = math.rsqrt %84 : vector<8x1xf32>
    %86 = vector.broadcast %85 : vector<8x1xf32> to vector<8x32xf32>
    %87 = arith.mulf %77, %86 : vector<8x32xf32>
    %c0_38 = arith.constant 0 : index
    %c0_39 = arith.constant 0 : index
    %88 = vector.load %arg9[%c0_38, %c0_39] : memref<1x32xf32, #tpu.memory_space<vmem>>, vector<1x32xf32>
    %89 = vector.broadcast %88 : vector<1x32xf32> to vector<8x32xf32>
    %90 = arith.mulf %87, %89 : vector<8x32xf32>
    %c0_40 = arith.constant 0 : index
    %c0_41 = arith.constant 0 : index
    %91 = vector.load %arg10[%c0_40, %c0_41] : memref<1x32xf32, #tpu.memory_space<vmem>>, vector<1x32xf32>
    %92 = vector.broadcast %91 : vector<1x32xf32> to vector<8x32xf32>
    %93 = arith.addf %90, %92 : vector<8x32xf32>
    %c0_42 = arith.constant 0 : index
    %c0_43 = arith.constant 0 : index
    %c0_44 = arith.constant 0 : index
    %94 = vector.load %arg11[%c0_42, %c0_43, %c0_44] : memref<1x8x32xf32, #tpu.memory_space<vmem>>, vector<1x8x32xf32>
    %95 = vector.shape_cast %94 : vector<1x8x32xf32> to vector<8x32xf32>
    %96 = vector.shape_cast %93 : vector<8x32xf32> to vector<1x8x32xf32>
    tpu.vector_store %arg11[%c0_42, %c0_43, %c0_44], %96 {strides = array<i32>} : memref<1x8x32xf32, #tpu.memory_space<vmem>>, vector<1x8x32xf32>,
    return
  }
  func.func @transform_0(%arg0: i32) -> (i32, i32, i32) {
    %c0_i32 = arith.constant 0 : i32
    %c0_i32_0 = arith.constant 0 : i32
    %c0_i32_1 = arith.constant 0 : i32
    return %arg0, %c0_i32, %c0_i32_0 : i32, i32, i32
  }
  func.func @transform_1(%arg0: i32) -> (i32, i32, i32) {
    %c0_i32 = arith.constant 0 : i32
    %c0_i32_0 = arith.constant 0 : i32
    %c0_i32_1 = arith.constant 0 : i32
    return %arg0, %c0_i32, %c0_i32_0 : i32, i32, i32
  }
  func.func @transform_2(%arg0: i32) -> (i32, i32) {
    %c0_i32 = arith.constant 0 : i32
    %c0_i32_0 = arith.constant 0 : i32
    %c0_i32_1 = arith.constant 0 : i32
    return %c0_i32, %c0_i32_0 : i32, i32
  }
  func.func @transform_3(%arg0: i32) -> (i32, i32) {
    %c0_i32 = arith.constant 0 : i32
    %c0_i32_0 = arith.constant 0 : i32
    %c0_i32_1 = arith.constant 0 : i32
    return %c0_i32, %c0_i32_0 : i32, i32
  }
  func.func @transform_4(%arg0: i32) -> (i32, i32) {
    %c0_i32 = arith.constant 0 : i32
    %c0_i32_0 = arith.constant 0 : i32
    %c0_i32_1 = arith.constant 0 : i32
    return %c0_i32, %c0_i32_0 : i32, i32
  }
  func.func @transform_5(%arg0: i32) -> (i32, i32) {
    %c0_i32 = arith.constant 0 : i32
    %c0_i32_0 = arith.constant 0 : i32
    %c0_i32_1 = arith.constant 0 : i32
    return %c0_i32, %c0_i32_0 : i32, i32
  }
  func.func @transform_6(%arg0: i32) -> (i32, i32, i32) {
    %c0_i32 = arith.constant 0 : i32
    %c0_i32_0 = arith.constant 0 : i32
    %c0_i32_1 = arith.constant 0 : i32
    %c0_i32_2 = arith.constant 0 : i32
    return %c0_i32, %c0_i32_0, %c0_i32_1 : i32, i32, i32
  }
  func.func @transform_7(%arg0: i32) -> (i32, i32) {
    %c0_i32 = arith.constant 0 : i32
    %c0_i32_0 = arith.constant 0 : i32
    %c0_i32_1 = arith.constant 0 : i32
    return %c0_i32, %c0_i32_0 : i32, i32
  }
  func.func @transform_8(%arg0: i32) -> (i32, i32) {
    %c0_i32 = arith.constant 0 : i32
    %c0_i32_0 = arith.constant 0 : i32
    %c0_i32_1 = arith.constant 0 : i32
    return %c0_i32, %c0_i32_0 : i32, i32
  }
  func.func @transform_9(%arg0: i32) -> (i32, i32) {
    %c0_i32 = arith.constant 0 : i32
    %c0_i32_0 = arith.constant 0 : i32
    %c0_i32_1 = arith.constant 0 : i32
    return %c0_i32, %c0_i32_0 : i32, i32
  }
  func.func @transform_10(%arg0: i32) -> (i32, i32, i32) {
    %c0_i32 = arith.constant 0 : i32
    %c0_i32_0 = arith.constant 0 : i32
    %c0_i32_1 = arith.constant 0 : i32
    return %arg0, %c0_i32, %c0_i32_0 : i32, i32, i32
  }
}

</mosaic_0001>

<bundles_post_ra>
// kernel: tpu_custom_call.1
= control target key start
LH: loop header
LB: loop body
LE: loop exit
PB: predicated region body
PF: predicated region fallthrough
CT: control target
= control target key end

     0   :  { %s2265_s0 = inlined_call_operand.hbm [shape: f32[2,8,32], index: 0, kind: input, shape index: {}]   ;;  %s2266_s1 = inlined_call_operand.hbm [shape: f32[2,8,32], index: 1, kind: input, shape index: {}]   ;;  %s2267_s2 = inlined_call_operand.hbm [shape: bf16[32,64], index: 2, kind: input, shape index: {}]   ;;  %s2268_s3 = inlined_call_operand.vmem [shape: f32[1,64], index: 3, kind: input, shape index: {}]   ;;  %s2269_s4 = inlined_call_operand.hbm [shape: bf16[32,32], index: 4, kind: input, shape index: {}]   ;;  %s2270_s5 = inlined_call_operand.vmem [shape: f32[1,32], index: 5, kind: input, shape index: {}]   ;;  %s2271_s6 = inlined_call_operand.hbm [shape: bf16[4,8,32], index: 6, kind: input, shape index: {}]   ;;  %s2272_s7 = inlined_call_operand.vmem [shape: f32[1,32], index: 7, kind: input, shape index: {}]   ;;  %s2273_s8 = inlined_call_operand.vmem [shape: f32[1,32], index: 8, kind: input, shape index: {}]   ;;  %s2274_s9 = inlined_call_operand.vmem [shape: f32[1,32], index: 9, kind: input, shape index: {}]   ;;  %s2275_s10 = inlined_call_operand.hbm [shape: f32[2,8,32], index: 10, kind: output, shape index: {}]  }
   0x1   :  { %2282 = sst [smem:[#allocation23_spill]] %s2267_s2 }
   0x2   :  { %2283 = sst [smem:[#allocation24_spill]] %s2269_s4 }
   0x3   :  { %2284 = sst [smem:[#allocation25_spill]] %s2271_s6 }
   0x4   :  { %15 = vsyncpa [#allocation3], 0 }
   0x5   :  { %17 = vsyncpa [#allocation3 + $0x1], 0 }
   0x6   :  { %18 = vsyncpa [#allocation6], 0 }
   0x7   :  { %20 = vsyncpa [#allocation6 + $0x1], 0 }
   0x8   :  { %21 = vsyncpa [#allocation9], 0 }
   0x9   :  { %22 = vsyncpa [#allocation4], 0 }
   0xa   :  { %24 = vsyncpa [#allocation4 + $0x1], 0  ;;  %s1871_s13 = smov 0   ;;  %s1873_s14 = smov 0  }
   0xb   :  { %s1875_s15 = smov 0   ;;  %s1877_s16 = smov 0  }
   0xc LB: > { %2285 = sst [smem:[#allocation17_spill]] %s1790_s13  ;;  %s1895_s20 = sadd.s32 4294967295, %s1802_s16   ;;  %s1802_s16 = sphi %s1877_s16, %s2305_s16   ;;  %s1798_s15 = sphi %s1875_s15, %s2307_s15   ;;  %s1794_s14 = sphi %s1873_s14, %s2309_s14   ;;  %s1790_s13 = sphi %s1871_s13, %s2308_s13  }
   0xd   : > { %2286 = sst [smem:[#allocation18_spill]] %s1798_s15  ;;  %p1394_p0 = scmp.ge.s32.totalorder %s1802_s16, 1 }
   0xe   : > { %2287 = sst [smem:[#allocation19_spill]] %s1802_s16  ;;  %p51_p1 = scmp.eq.s32.totalorder %s1895_s20, 0 }
   0xf   : > { %s2288_s2 = sld [smem:[#allocation23_spill]]  ;;  %p281_p2 = scmp.lt.s32.totalorder %s1802_s16, 3 }
  0x10   : > { %s1804_s22 = smov [#allocation7]   ;;  %s2290_s4 = sld [smem:[#allocation24_spill]] }
  0x11   : > { %p1900_p3 = pnand %p1394_p0, %p281_p2  ;;  %s294_s23 = sshll.u32 %s1804_s22, 4  ;;  %s295_s23 = int_to_ptr.vmem [resolvable:$true] %s294_s23 }
  0x12   : > { %s2292_s6 = sld [smem:[#allocation25_spill]]  ;;  %s1805_s11 = smov [#allocation8]  }
  0x13   : > { %p1466_p4 = pneg %p1900_p3  ;;  %s311_s12 = sshll.u32 %s1805_s11, 4  ;;  %s312_s12 = int_to_ptr.vmem [resolvable:$true] %s311_s12 }
  0x14   : > { %s1806_s17 = smov 64   ;;  %s1807_s18 = smov 4  }
  0x15   : > { %s292_s19 = sshll.u32 %s2288_s2, 4  ;;  %p1912_p6 = pnand %p1466_p4, %p51_p1  ;;  %s293_s19 = int_to_ptr.hbm [resolvable:$true] %s292_s19 }
  0x16   : > { %s309_s26 = sshll.u32 %s2290_s4, 4  ;;  %s1808_s22 = smov [#allocation10]   ;;  %s310_s26 = int_to_ptr.hbm [resolvable:$true] %s309_s26 }
  0x17   : > { %1469 = dma.hbm_to_vmem [thread:$0]  (!%p1912_p6), %s293_s19, 256, %s295_s23, [#allocation6], %s1806_s17, %s1806_s17, %s1807_s18  }
  0x18   : > { %s326_s30 = sshll.u32 %s2292_s6, 4  ;;  %s328_s24 = sshll.u32 %s1808_s22, 4  ;;  %s327_s30 = int_to_ptr.hbm [resolvable:$true] %s326_s30  ;;  %s329_s24 = int_to_ptr.vmem [resolvable:$true] %s328_s24 }
  0x19   : > { %1472 = dma.hbm_to_vmem [thread:$0]  (!%p1912_p6), %s310_s26, 256, %s312_s12, [#allocation9], %s1806_s17, %s1806_s17, %s1807_s18  }
  0x1a   : > { %1475 = dma.hbm_to_vmem [thread:$0]  (!%p1912_p6), %s327_s30, 256, %s329_s24, [#allocation9], %s1806_s17, %s1806_s17, %s1807_s18  }
  0x1b   : > { %s1393_s25 = sadd.s32 4294967294, %s1802_s16   ;;  %s1927_s28 = sadd.s32 1, %s1802_s16  }
  0x1c   : > { %2293 = sst [smem:[#allocation20_spill]] %s1927_s28  ;;  %s37_s29 = sadd.s32 1, %s1798_s15 }
  0x1d   : > { %s34_s19 = ssub.s32 %s1802_s16, %s1927_s28  ;;  %p44_p7 = scmp.ne.s32.totalorder %s1798_s15, %s1794_s14 }
  0x1e   : > { %p35_p8 = scmp.eq.s32.totalorder %s34_s19, 0  ;;  %p45_p9 = scmp.eq.s32.totalorder %s1802_s16, 0 }
  0x1f   : > { %p50_p10 = scmp.ne.s32.totalorder %s1794_s14, %s1790_s13  ;;  %p268_p11 = scmp.eq.s32.totalorder %s1895_s20, 1 }
  0x20   : > { %s1939_s23 = scalar_select %p35_p8, %s1798_s15, %s37_s29  }
  0x21   : > { %p1941_p12 = por %p45_p9, %p44_p7  ;;  %p1947_p13 = por %p51_p1, %p50_p10 }
  0x22   : > { %2294 = sst [smem:[#allocation21_spill]] %s1939_s23  ;;  %p1951_p0 = por %p268_p11, %p44_p7 }
  0x23   : > { %p274_p2 = scmp.eq.s32.totalorder %s1393_s25, 1  ;;  %p1490_p4 = scmp.lt.s32.totalorder %s1802_s16, 2 }
  0x24   : > { %s351_s11 = sand.u32 1, %s1798_s15   ;;  %s1400_s18 = sshll.u32 %s1802_s16, 3 }
  0x25   : > { %p1957_p6 = por %p274_p2, %p50_p10  ;;  %s1399_s17 = sshll.u32 %s351_s11, 3 }
  0x26   : > { %s359_s29 = scalar_lea.hbm %s2265_s0, %s1400_s18  ;;  %s355_s2 = scalar_lea.vmem [#allocation2], %s1399_s17 }
  0x27   : > { %s2298_s12 = scalar_select %p1957_p6, 1, 0 }
  0x28   : > { %s361_s19 = sshll.u32 %s359_s29, 4  ;;  %s363_s4 = sshll.u32 %s355_s2, 4  ;;  %s362_s19 = int_to_ptr.hbm [resolvable:$true] %s361_s19  ;;  %s364_s4 = int_to_ptr.vmem [resolvable:$true] %s363_s4 }
  0x29   : > { %2299 = sst [smem:[#allocation22_spill]] %s2298_s12  ;;  %p1967_p7 = pnand %p1490_p4, %p1941_p12 }
  0x2a   : > { %s378_s15 = scalar_lea.hbm %s2266_s1, %s1400_s18  ;;  %s370_s28 = sand.u32 1, %s1802_s16  }
  0x2b   : > { %s352_s12 = scalar_lea.sflag [#allocation3], %s351_s11  ;;  %s1664_s22 = sshra.s32 %s362_s19, 4  ;;  %s1665_s22 = int_to_ptr.hbm [resolvable:$true] %s1664_s22 }
  0x2c   : > { %s1666_s24 = scalar_lea.hbm %s1665_s22, 8  ;;  %p1668_p9 = pneg %p1967_p7 }
  0x2d   : > { %p1667_p8 = scmp.ne.s32.totalorder %s1665_s22, %s1666_s24  ;;  %s1671_s29 = scalar_lea.hbm %s2265_s0, 16 }
  0x2e   : > { %p1672_p12 = scmp.lt.s32.totalorder %s1665_s22, %s2265_s0  ;;  %p1673_p2 = scmp.lt.s32.totalorder %s1671_s29, %s1666_s24 }
  0x2f   : > { %p1669_p10 = pnand %p1668_p9, %p1667_p8 }
  0x30   : > { %p1674_p4 = por %p1673_p2, %p1672_p12 }
  0x31   : > { %p1670_p11 = pneg %p1669_p10 }
  0x33   : > { %p1675_p5 = pnand %p1674_p4, %p1670_p11 }
  0x35   : > { %1678 = shalt.err (!%p1675_p5)
}
  0x36   : > { %1479 = dma.hbm_to_vmem [thread:$0]  (!%p1967_p7), %s362_s19, 128, %s364_s4, %s352_s12  }
  0x37   : > { %s380_s11 = sshll.u32 %s378_s15, 4  ;;  %s374_s18 = scalar_lea.vmem [#allocation5], %s1399_s17  ;;  %s381_s11 = int_to_ptr.hbm [resolvable:$true] %s380_s11 }
  0x38   : > { %s382_s16 = sshll.u32 %s374_s18, 4  ;;  %s371_s13 = scalar_lea.sflag [#allocation6], %s370_s28  ;;  %s383_s16 = int_to_ptr.vmem [resolvable:$true] %s382_s16 }
  0x39   : > { %s1694_s2 = sshra.s32 %s381_s11, 4  ;;  %s1701_s29 = scalar_lea.hbm %s2266_s1, 16  ;;  %s1695_s2 = int_to_ptr.hbm [resolvable:$true] %s1694_s2 }
  0x3a   : > { %s1696_s26 = scalar_lea.hbm %s1695_s2, 8  ;;  %p1702_p5 = scmp.lt.s32.totalorder %s1695_s2, %s2266_s1 }
  0x3b   : > { %p1697_p8 = scmp.ne.s32.totalorder %s1695_s2, %s1696_s26  ;;  %p1703_p11 = scmp.lt.s32.totalorder %s1701_s29, %s1696_s26 }
  0x3d   : > { %p1699_p10 = pnand %p1697_p8, %p1668_p9  ;;  %p1704_p2 = por %p1703_p11, %p1702_p5 }
  0x3f   : > { %p1700_p12 = pneg %p1699_p10 }
  0x41   : > { %p1705_p4 = pnand %p1704_p2, %p1700_p12 }
  0x43   : > { %1708 = shalt.err (!%p1705_p4)
}
  0x44   : > { %1482 = dma.hbm_to_vmem [thread:$0]  (!%p1967_p7), %s381_s11, 128, %s383_s16, %s371_s13  }
  0x45   : > { %391 = sbr.rel (%p1900_p3) target bundleno = 1424 (0x590), region = 60  ;;  %s2002_s15 = sand.u32 (!%p1900_p3), 1, %s1794_s14  }
  0x46   : > { %s2005_s28 = sshll.u32 (!%p1900_p3), %s2002_s15, 3  ;;  %s394_s12 = scalar_lea.sflag (!%p1900_p3), [#allocation3], %s2002_s15 }
  0x47   : > { %s397_s17 = scalar_lea.vmem (!%p1900_p3), [#allocation2], %s2005_s28 }
  0x4a   : > { %1769 = dma.done.wait (%p1947_p13), %s394_s12, 128  }
  0x4b   : > { %1771 = vsyncadd (%p1947_p13), %s394_s12, 4294967168  ;;  %s403_s13 = sand.u32 1, %s1895_s20   ;;  %s407_s21 = scalar_lea.vmem [#allocation5], %s2005_s28 }
  0x4c   : > { %s404_s16 = scalar_lea.sflag [#allocation6], %s403_s13 }
  0x4d   : > { %1773 = dma.done.wait (%p1947_p13), %s404_s16, 128  }
  0x4e   : > { %1775 = vsyncadd (%p1947_p13), %s404_s16, 4294967168 }
  0x4f   : > { %1777 = dma.done.wait (%p51_p1), [#allocation6], 256  }
  0x50   : > { %1779 = vsyncadd (%p51_p1), [#allocation6], 4294967040 }
  0x51   : > { %1781 = dma.done.wait (%p51_p1), [#allocation9], 512  }
  0x52   : > { %1783 = vsyncadd (%p51_p1), [#allocation9], 4294966784  ;;  %v1445_v0 = vld [vmem:[#allocation7 + $0x8] sm:$0xff]  ;;  %v1444_v2 = vld [vmem:[#allocation7] sm:$0xff]  ;;  %vm490_vm0 = vcmask 261120   ;;  %s1809_s25 = smov 104  }
  0x53   : > { %v2027_v1 = vld [vmem:[%s397_s17] sm:$0xff]  ;;  %v467_v3 = vld [vmem:[%s407_s21] sm:$0xff]  ;;  %500 = vmatpush.bf16.msra.mxu0 %v1445_v0  ;;  %s1810_s23 = smov 112   ;;  %s1811_s11 = smov 120   ;;  %v1813_v16 = vmov 1983009808  }
  0x54   : > { %v468_v4 = vadd.f32 %v467_v3, %v2027_v1  ;;  %v1549_v6 = vld [vmem:[%s2268_s3] ss:$0 sm:$0xff]  ;;  %s1812_s18 = smov 96   ;;  %v1447_v15 = vld [vmem:[#allocation8 + $0x8] sm:$0xff]  ;;  %v560_v17 = vunpack.c.l.s4 %v1813_v16  ;;  %v1446_v19 = vld [vmem:[#allocation8] sm:$0xff]  ;;  %vm555_vm1 = vcmask 1047556   ;;  %v507_v23 = vpack.c.bf16 %v2027_v1, %v2027_v1 }
  0x55   : > { %537 = vmatpush.bf16.msra.mxu1 %v1447_v15  ;;  %v1814_v31 = vmov 1934713408   ;;  %vm915_vm2 = vcmask 64512   ;;  %vm1047_vm3 = vcmask 1043456   ;;  %s1441_s29 = sshll.u32 %s1895_s20, 3  ;;  %s464_s20 = scalar_lea.vmem [#allocation11], %s2005_s28 }
  0x56   : > { %v469_v5 = vpack.c.bf16 %v468_v4, %v468_v4  ;;  %v2039_v24 = vunpack.c.0.s8 %v560_v17  ;;  %v584_v32 = vunpack.c.l.s4 %v1814_v31  ;;  %s1267_s13 = scalar_lea.hbm %s2275_s10, %s1441_s29  ;;  %s1269_s27 = sshll.u32 %s464_s20, 4  ;;  %s1270_s27 = int_to_ptr.vmem [resolvable:$true] %s1269_s27 }
  0x57   : > { %501 = vmatpush.bf16.msra.mxu0 %v1444_v2  ;;  %s1271_s19 = sshll.u32 %s1267_s13, 4  ;;  %s1744_s28 = scalar_lea.hbm %s2275_s10, 16  ;;  %s1272_s19 = int_to_ptr.hbm [resolvable:$true] %s1271_s19 }
  0x58   : > { %v2050_v38 = vunpack.c.0.s8 %v584_v32 }
  0x59   : > { %538 = vmatpush.bf16.msra.mxu1 %v1446_v19 }
  0x5a   : > { %1418 = vmatmul.msk.bf16.vlgmr.msra.gmra.mxu0 %vm490_vm0, %v469_v5 }
  0x5c   : > { %1427 = vmatmul.msk.bf16.vlgmr.msra.gmra.mxu1 %vm490_vm0, %v507_v23 }
  0xd7   : > { %v503_v7 = vpop.f32.mrf.mxu0 }
  0xd8   : > { %v504_v8 = vadd.f32 %v1549_v6, %v503_v7 }
  0xda   : > { %551 = vrot.lane.b32.xlu1 %v504_v8, %s1809_s25  ;;  %548 = vrot.lane.b32.xlu0 %v504_v8, %s1810_s23  ;;  %v557_v22 = vrot.slane %v504_v8, 4 }
  0xdf   : > { %v505_v9 = vpop.f32.mrf.mxu0 }
  0xe2   : > { %545 = vrot.lane.b32.xlu0 %v504_v8, %s1811_s11 }
 0x14c   : > { %v549_v10 = vpop.permute.xlu0 %548  ;;  %v552_v12 = vpop.permute.xlu1 %551 }
 0x14d   : > { %v1539_v11 = vpack.i.bf16 %v549_v10, %v504_v8  ;;  %v554_v18 = vrot.slane %v549_v10, 4  ;;  %v567_v21 = vrot.slane %v552_v12, 4  ;;  %v558_v26 = vsel %vm555_vm1, %v549_v10, %v557_v22 }
 0x14e   : > { %v566_v30 = vperm.slane %v558_v26, %v2039_v24 }
 0x14f   : > { %1540 = vrot.lane.b32.xlu1 %v1539_v11, %s1812_s18  ;;  %v556_v25 = vsel %vm555_vm1, %v554_v18, %v504_v8 }
 0x150   : > { %v562_v29 = vperm.slane %v556_v25, %v2039_v24  ;;  %v593_v37 = vrot.slane %v566_v30, 4 }
 0x152   : > { %v581_v35 = vrot.slane %v562_v29, 4 }
 0x154   : > { %v546_v13 = vpop.permute.xlu0 %545 }
 0x155   : > { %v1544_v14 = vpack.i.bf16 %v552_v12, %v546_v13  ;;  %v569_v20 = vrot.slane %v546_v13, 4  ;;  %v568_v27 = vsel %vm555_vm1, %v567_v21, %v546_v13 }
 0x156   : > { %v574_v33 = vperm.slane %v568_v27, %v2039_v24 }
 0x157   : > { %1545 = vrot.lane.b32.xlu2 %v1544_v14, %s1812_s18  ;;  %v570_v28 = vsel %vm555_vm1, %v552_v12, %v569_v20 }
 0x158   : > { %v578_v34 = vperm.slane %v570_v28, %v2039_v24  ;;  %v579_v39 = vrot.slane %v574_v33, 4  ;;  %v582_v40 = vsel %vm555_vm1, %v574_v33, %v581_v35 }
 0x159   : > { %v590_v46 = vperm.slane %v582_v40, %v2050_v38 }
 0x15a   : > { %v591_v41 = vrot.slane %v578_v34, 4  ;;  %v594_v42 = vsel %vm555_vm1, %v578_v34, %v593_v37  ;;  %v580_v45 = vsel %vm555_vm1, %v579_v39, %v562_v29 }
 0x15b   : > { %v602_v48 = vperm.slane %v594_v42, %v2050_v38  ;;  %v586_v51 = vperm.slane %v580_v45, %v2050_v38  ;;  %v605_v53 = vrot.slane %v590_v46, 4 }
 0x15c   : > { %v592_v47 = vsel %vm555_vm1, %v591_v41, %v566_v30 }
 0x15d   : > { %v598_v52 = vperm.slane %v592_v47, %v2050_v38  ;;  %v609_v54 = vrot.slane %v602_v48, 4  ;;  %v603_v57 = vrot.slane %v586_v51, 4  ;;  %v606_v59 = vsel %vm555_vm1, 0.0, %v605_v53 }
 0x15e   : > { %v616_v6 = vrot.slane %v606_v59, 4  ;;  %v611_v15 = vsel %vm555_vm1, %v605_v53, %v586_v51 }
 0x15f   : > { %v607_v60 = vrot.slane %v598_v52, 4  ;;  %v610_v63 = vsel %vm555_vm1, 0.0, %v609_v54  ;;  %v604_v5 = vsel %vm555_vm1, 0.0, %v603_v57  ;;  %v622_v16 = vsel %vm555_vm1, %v609_v54, %v598_v52 }
 0x160   : > { %v627_v8 = vrot.slane %v610_v63, 4  ;;  %v617_v21 = vsel %vm555_vm1, %v616_v6, %v604_v5  ;;  %v615_v26 = vperm.slane %v611_v15, %v2039_v24  ;;  %v626_v27 = vperm.slane %v622_v16, %v2039_v24 }
 0x161   : > { %v608_v7 = vsel %vm555_vm1, 0.0, %v607_v60  ;;  %v621_v32 = vperm.slane %v617_v21, %v2039_v24 }
 0x162   : > { %v628_v25 = vsel %vm555_vm1, %v627_v8, %v608_v7  ;;  %v635_v39 = vrot.slane %v615_v26, 4  ;;  %v647_v40 = vrot.slane %v626_v27, 4 }
 0x163   : > { %v632_v33 = vperm.slane %v628_v25, %v2039_v24  ;;  %v633_v51 = vrot.slane %v621_v32, 4 }
 0x164   : > { %v636_v59 = vsel %vm555_vm1, %v621_v32, %v635_v39 }
 0x165   : > { %v645_v52 = vrot.slane %v632_v33, 4  ;;  %v648_v60 = vsel %vm555_vm1, %v632_v33, %v647_v40  ;;  %v644_v8 = vperm.slane %v636_v59, %v2050_v38 }
 0x167   : > { %v646_v5 = vsel %vm555_vm1, %v645_v52, %v626_v27 }
 0x168   : > { %v652_v15 = vperm.slane %v646_v5, %v2050_v38 }
 0x1b1   : > { %v1546_v36 = vpop.permute.xlu2 %1545 }
 0x1b2   : > { %v1548_v43 = vunpack.i.h.bf16 %v1546_v36  ;;  %v1547_v44 = vunpack.i.l.bf16 %v1546_v36 }
 0x1b4   : > { %v689_v49 = vrot.slane %v1548_v43, 4  ;;  %v691_v50 = vrot.slane %v1547_v44, 4 }
 0x1b6   : > { %v690_v55 = vsel %vm555_vm1, %v689_v49, %v1547_v44  ;;  %v692_v56 = vsel %vm555_vm1, %v1548_v43, %v691_v50 }
 0x1b7   : > { %v696_v0 = vperm.slane %v690_v55, %v2039_v24  ;;  %v700_v2 = vperm.slane %v692_v56, %v2039_v24 }
 0x1b9   : > { %v701_v11 = vrot.slane %v696_v0, 4  ;;  %v713_v12 = vrot.slane %v700_v2, 4 }
 0x1c1   : > { %v1541_v58 = vpop.permute.xlu1 %1540 }
 0x1c2   : > { %v1543_v61 = vunpack.i.h.bf16 %v1541_v58  ;;  %v1542_v62 = vunpack.i.l.bf16 %v1541_v58 }
 0x1c4   : > { %v677_v3 = vrot.slane %v1543_v61, 4  ;;  %v679_v4 = vrot.slane %v1542_v62, 4 }
 0x1c6   : > { %v678_v9 = vsel %vm555_vm1, %v677_v3, %v1542_v62  ;;  %v680_v10 = vsel %vm555_vm1, %v1543_v61, %v679_v4  ;;  %v634_v4 = vsel %vm555_vm1, %v633_v51, %v615_v26  ;;  %v663_v26 = vrot.slane %v644_v8, 4 }
 0x1c7   : > { %v684_v13 = vperm.slane %v678_v9, %v2039_v24  ;;  %v688_v14 = vperm.slane %v680_v10, %v2039_v24  ;;  %v656_v9 = vperm.slane %v648_v60, %v2050_v38 }
 0x1c9   : > { %v702_v17 = vsel %vm555_vm1, %v701_v11, %v684_v13  ;;  %v703_v18 = vrot.slane %v684_v13, 4  ;;  %v714_v19 = vsel %vm555_vm1, %v713_v12, %v688_v14  ;;  %v715_v20 = vrot.slane %v688_v14, 4 }
 0x1ca   : > { %v708_v22 = vperm.slane %v702_v17, %v2050_v38  ;;  %v720_v23 = vperm.slane %v714_v19, %v2050_v38  ;;  %v640_v14 = vperm.slane %v634_v4, %v2050_v38  ;;  %v661_v25 = vrot.slane %v656_v9, 4 }
 0x1cb   : > { %v704_v28 = vsel %vm555_vm1, %v696_v0, %v703_v18  ;;  %v716_v29 = vsel %vm555_vm1, %v700_v2, %v715_v20 }
 0x1cc   : > { %v712_v30 = vperm.slane %v704_v28, %v2050_v38  ;;  %v724_v31 = vperm.slane %v716_v29, %v2050_v38  ;;  %v725_v34 = vrot.slane %v708_v22, 4  ;;  %v729_v36 = vrot.slane %v720_v23, 4 }
 0x1cd   : > { %v659_v32 = vrot.slane %v640_v14, 4 }
 0x1ce   : > { %v727_v35 = vrot.slane %v712_v30, 4  ;;  %v731_v37 = vrot.slane %v724_v31, 4  ;;  %v730_v49 = vsel %vm555_vm1, 0.0, %v729_v36  ;;  %v726_v50 = vsel %vm555_vm1, 0.0, %v725_v34 }
 0x1cf   : > { %v657_v31 = vrot.slane %v652_v15, 4  ;;  %v664_v36 = vsel %vm555_vm1, %v656_v9, %v663_v26  ;;  %v660_v39 = vsel %vm555_vm1, %v652_v15, %v659_v32 }
 0x1d0   : > { %v728_v41 = vsel %vm555_vm1, 0.0, %v727_v35  ;;  %v732_v42 = vsel %vm555_vm1, 0.0, %v731_v37  ;;  %v744_v43 = vsel %vm555_vm1, %v731_v37, %v720_v23  ;;  %v733_v44 = vsel %vm555_vm1, %v727_v35, %v708_v22 }
 0x1d1   : > { %v738_v45 = vrot.slane %v728_v41, 4  ;;  %v749_v46 = vrot.slane %v732_v42, 4  ;;  %v737_v47 = vperm.slane %v733_v44, %v2039_v24  ;;  %v748_v48 = vperm.slane %v744_v43, %v2039_v24  ;;  %v540_v44 = vpop.f32.mrf.mxu1 }
 0x1d2   : > { %v662_v35 = vsel %vm555_vm1, %v661_v25, %v644_v8  ;;  %v658_v37 = vsel %vm555_vm1, %v657_v31, %v640_v14  ;;  %v910_v41 = vpack.c.bf16 %v664_v36, %v664_v36  ;;  %v908_v43 = vpack.c.bf16 %v660_v39, %v660_v39 }
 0x1d3   : > { %v739_v53 = vsel %vm555_vm1, %v738_v45, %v726_v50  ;;  %v750_v54 = vsel %vm555_vm1, %v749_v46, %v730_v49  ;;  %v757_v55 = vrot.slane %v737_v47, 4  ;;  %v769_v56 = vrot.slane %v748_v48, 4 }
 0x1d4   : > { %v743_v57 = vperm.slane %v739_v53, %v2039_v24  ;;  %v754_v58 = vperm.slane %v750_v54, %v2039_v24  ;;  %v909_v40 = vpack.c.bf16 %v662_v35, %v662_v35  ;;  %v907_v42 = vpack.c.bf16 %v658_v37, %v658_v37 }
 0x1d6   : > { %v758_v61 = vsel %vm555_vm1, %v743_v57, %v757_v55  ;;  %v770_v62 = vsel %vm555_vm1, %v754_v58, %v769_v56  ;;  %v755_v63 = vrot.slane %v743_v57, 4  ;;  %v767_v0 = vrot.slane %v754_v58, 4  ;;  %v1550_v58 = vld [vmem:[%s2270_s5] ss:$0 sm:$0xff] }
 0x1d7   : > { %v766_v2 = vperm.slane %v758_v61, %v2050_v38  ;;  %v778_v3 = vperm.slane %v770_v62, %v2050_v38  ;;  %v541_v59 = vadd.f32 %v1550_v58, %v540_v44 }
 0x1d8   : > { %v756_v6 = vsel %vm555_vm1, %v755_v63, %v737_v47  ;;  %v768_v7 = vsel %vm555_vm1, %v767_v0, %v748_v48 }
 0x1d9   : > { %v783_v10 = vrot.slane %v778_v3, 4  ;;  %v785_v11 = vrot.slane %v766_v2, 4  ;;  %v762_v12 = vperm.slane %v756_v6, %v2050_v38  ;;  %v774_v13 = vperm.slane %v768_v7, %v2050_v38  ;;  %v542_v45 = vpop.f32.mrf.mxu1 }
 0x1db   : > { %v784_v16 = vsel %vm555_vm1, %v783_v10, %v766_v2  ;;  %v786_v17 = vsel %vm555_vm1, %v778_v3, %v785_v11  ;;  %v779_v18 = vrot.slane %v774_v13, 4  ;;  %v781_v19 = vrot.slane %v762_v12, 4 }
 0x1dc   : > { %v913_v20 = vpack.c.bf16 %v784_v16, %v784_v16  ;;  %v914_v21 = vpack.c.bf16 %v786_v17, %v786_v17  ;;  %v799_v17 = vrot.slane %v541_v59, 4 }
 0x1dd   : > { %v780_v22 = vsel %vm555_vm1, %v779_v18, %v762_v12  ;;  %v782_v23 = vsel %vm555_vm1, %v774_v13, %v781_v19 }
 0x1de   : > { %v958_v27 = vsel %vm915_vm2, %v913_v20, 0  ;;  %v977_v28 = vsel %vm915_vm2, %v914_v21, 0  ;;  %v911_v29 = vpack.c.bf16 %v780_v22, %v780_v22  ;;  %v912_v30 = vpack.c.bf16 %v782_v23, %v782_v23 }
 0x1df   : > { %967 = vmatpush.bf16.xpose.msrb.mxu0 %v958_v27  ;;  %986 = vmatpush.bf16.xpose.msrb.mxu1 %v977_v28 }
 0x1e0   : > { %v920_v33 = vsel %vm915_vm2, %v911_v29, 0  ;;  %v939_v34 = vsel %vm915_vm2, %v912_v30, 0 }
 0x1e1   : > { %929 = vmatpush.bf16.xpose.msra.mxu2 %v920_v33  ;;  %948 = vmatpush.bf16.xpose.msra.mxu3 %v939_v34 }
 0x1e6   : > { %1430 = vmatmul.msk.bf16.vlgmr.msrb.gmra.mxu0 %vm915_vm2, %v909_v40  ;;  %1431 = vmatmul.msk.bf16.vlgmr.msrb.gmra.mxu1 %vm915_vm2, %v910_v41 }
 0x1e8   : > { %1428 = vmatmul.msk.bf16.vlgmr.msra.gmra.mxu2 %vm915_vm2, %v907_v42  ;;  %1429 = vmatmul.msk.bf16.vlgmr.msra.gmra.mxu3 %vm915_vm2, %v908_v43 }
 0x263   : > { %v969_v46 = vpop.f32.mrf.mxu0  ;;  %v988_v47 = vpop.f32.mrf.mxu1 }
 0x264   : > { %v1001_v48 = vsel %vm915_vm2, %v988_v47, -inf  ;;  %v998_v49 = vsel %vm915_vm2, %v969_v46, -inf }
 0x265   : > { %1002 = vmax.xlane.f32.xlu2 %v1001_v48  ;;  %999 = vmax.xlane.f32.xlu1 %v998_v49 }
 0x26b   : > { %v931_v50 = vpop.f32.mrf.mxu2  ;;  %v950_v51 = vpop.f32.mrf.mxu3 }
 0x26c   : > { %v971_v52 = vpop.f32.mrf.mxu0  ;;  %v990_v53 = vpop.f32.mrf.mxu1  ;;  %v995_v54 = vsel %vm915_vm2, %v950_v51, -inf  ;;  %v992_v55 = vsel %vm915_vm2, %v931_v50, -inf }
 0x26d   : > { %996 = vmax.xlane.f32.xlu0 %v995_v54  ;;  %993 = vmax.xlane.f32.xlu2 %v992_v55 }
 0x273   : > { %v933_v56 = vpop.f32.mrf.mxu2  ;;  %v952_v57 = vpop.f32.mrf.mxu3 }
 0x27e   : > { %794 = vrot.lane.b32.xlu1 %v541_v59, %s1809_s25  ;;  %s1257_s25 = scalar_lea.sflag [#allocation4], %s2002_s15 }
 0x281   : > { %788 = vrot.lane.b32.xlu0 %v541_v59, %s1811_s11 }
 0x285   : > { %791 = vrot.lane.b32.xlu2 %v541_v59, %s1810_s23  ;;  %s1738_s23 = sshra.s32 %s1272_s19, 4  ;;  %s1739_s23 = int_to_ptr.hbm [resolvable:$true] %s1738_s23 }
 0x286   : > { %s1740_s11 = scalar_lea.hbm %s1739_s23, 8  ;;  %p1745_p7 = scmp.lt.s32.totalorder %s1739_s23, %s2275_s10 }
 0x287   : > { %p1741_p1 = scmp.ne.s32.totalorder %s1739_s23, %s1740_s11  ;;  %p1746_p9 = scmp.lt.s32.totalorder %s1744_s28, %s1740_s11 }
 0x289   : > { %p1742_p3 = pnand %p1741_p1, %p1951_p0  ;;  %p1747_p8 = por %p1746_p9, %p1745_p7 }
 0x28b   : > { %p1743_p13 = pneg %p1742_p3 }
 0x28d   : > { %p1748_p10 = pnand %p1747_p8, %p1743_p13 }
 0x2d8   : > { %v1003_v60 = vpop.xlane.xlu2 %1002  ;;  %v1000_v61 = vpop.xlane.xlu1 %999 }
 0x2d9   : > { %v1006_v62 = vsub.f32 %v969_v46, %v1000_v61  ;;  %v1007_v8 = vsub.f32 %v988_v47, %v1003_v60 }
 0x2db   : > { %v1012_v63 = vmul.f32 1.442695, %v1006_v62  ;;  %v1014_v10 = vmul.f32 1.442695, %v1007_v8 }
 0x2dd   : > { %1554 = vpow2.f32 %v1012_v63 }
 0x2e0   : > { %v997_v0 = vpop.xlane.xlu0 %996  ;;  %v994_v2 = vpop.xlane.xlu2 %993 }
 0x2e1   : > { %v1005_v3 = vsub.f32 %v950_v51, %v997_v0  ;;  %v1004_v4 = vsub.f32 %v931_v50, %v994_v2 }
 0x2e3   : > { %v1010_v5 = vmul.f32 1.442695, %v1005_v3  ;;  %v1008_v6 = vmul.f32 1.442695, %v1004_v4  ;;  %v2142_v7 = vpop.eup %1554 }
 0x2e4   : > { %v1022_v9 = vsel %vm915_vm2, %v2142_v7, 0.0 }
 0x2e5   : > { %1556 = vpow2.f32 %v1010_v5  ;;  %1023 = vadd.xlane.f32.xlu1 %v1022_v9 }
 0x2e6   : > { %1558 = vpow2.f32 %v1008_v6 }
 0x2e7   : > { %1560 = vpow2.f32 %v1014_v10 }
 0x2e8   : > { %v792_v11 = vpop.permute.xlu2 %791 }
 0x2e9   : > { %v797_v12 = vrot.slane %v792_v11, 4  ;;  %v800_v19 = vsel %vm555_vm1, %v792_v11, %v799_v17 }
 0x2ea   : > { %v808_v25 = vperm.slane %v800_v19, %v2039_v24 }
 0x2eb   : > { %v2146_v13 = vpop.eup %1556  ;;  %v798_v18 = vsel %vm555_vm1, %v797_v12, %v541_v59 }
 0x2ec   : > { %v2148_v14 = vpop.eup %1558  ;;  %v1019_v15 = vsel %vm915_vm2, %v2146_v13, 0.0  ;;  %v804_v21 = vperm.slane %v798_v18, %v2039_v24  ;;  %v835_v33 = vrot.slane %v808_v25, 4 }
 0x2ed   : > { %1020 = vadd.xlane.f32.xlu2 %v1019_v15  ;;  %v1016_v16 = vsel %vm915_vm2, %v2148_v14, 0.0  ;;  %v2157_v23 = vpop.eup %1560 }
 0x2ee   : > { %1017 = vadd.xlane.f32.xlu0 %v1016_v16  ;;  %v823_v29 = vrot.slane %v804_v21, 4  ;;  %v1025_v31 = vsel %vm915_vm2, %v2157_v23, 0.0 }
 0x2f0   : > { %v795_v20 = vpop.permute.xlu1 %794 }
 0x2f1   : > { %v809_v22 = vrot.slane %v795_v20, 4 }
 0x2f3   : > { %v789_v26 = vpop.permute.xlu0 %788 }
 0x2f4   : > { %v810_v27 = vsel %vm555_vm1, %v809_v22, %v789_v26  ;;  %v811_v28 = vrot.slane %v789_v26, 4 }
 0x2f5   : > { %v816_v30 = vperm.slane %v810_v27, %v2039_v24 }
 0x2f6   : > { %v812_v32 = vsel %vm555_vm1, %v795_v20, %v811_v28  ;;  %1026 = vadd.xlane.f32.xlu0 %v1025_v31 }
 0x2f7   : > { %v820_v34 = vperm.slane %v812_v32, %v2039_v24  ;;  %v821_v35 = vrot.slane %v816_v30, 4  ;;  %v824_v36 = vsel %vm555_vm1, %v816_v30, %v823_v29 }
 0x2f8   : > { %v832_v37 = vperm.slane %v824_v36, %v2050_v38 }
 0x2f9   : > { %v822_v39 = vsel %vm555_vm1, %v821_v35, %v804_v21  ;;  %v833_v40 = vrot.slane %v820_v34, 4  ;;  %v836_v41 = vsel %vm555_vm1, %v820_v34, %v835_v33 }
 0x2fa   : > { %v828_v42 = vperm.slane %v822_v39, %v2050_v38  ;;  %v844_v43 = vperm.slane %v836_v41, %v2050_v38  ;;  %v847_v44 = vrot.slane %v832_v37, 4 }
 0x2fb   : > { %v834_v45 = vsel %vm555_vm1, %v833_v40, %v808_v25 }
 0x2fc   : > { %v840_v46 = vperm.slane %v834_v45, %v2050_v38  ;;  %v845_v47 = vrot.slane %v828_v42, 4  ;;  %v848_v48 = vsel %vm555_vm1, 0.0, %v847_v44  ;;  %v851_v49 = vrot.slane %v844_v43, 4 }
 0x2fd   : > { %v853_v50 = vsel %vm555_vm1, %v847_v44, %v828_v42  ;;  %v858_v51 = vrot.slane %v848_v48, 4  ;;  %v1166_v48 = vld [vmem:[#allocation10 + $0x8] sm:$0xf] }
 0x2fe   : > { %v846_v52 = vsel %vm555_vm1, 0.0, %v845_v47  ;;  %v849_v53 = vrot.slane %v840_v46, 4  ;;  %v852_v54 = vsel %vm555_vm1, 0.0, %v851_v49  ;;  %v857_v55 = vperm.slane %v853_v50, %v2039_v24 }
 0x2ff   : > { %v859_v56 = vsel %vm555_vm1, %v858_v51, %v846_v52  ;;  %v864_v57 = vsel %vm555_vm1, %v851_v49, %v840_v46  ;;  %v869_v58 = vrot.slane %v852_v54, 4  ;;  %v1171_v49 = vsel %vm1047_vm3, %v1166_v48, 0  ;;  %v1189_v52 = vld [vmem:[#allocation10 + $0xc] sm:$0xf] }
 0x300   : > { %v850_v59 = vsel %vm555_vm1, 0.0, %v849_v53  ;;  %v863_v60 = vperm.slane %v859_v56, %v2039_v24  ;;  %v877_v61 = vrot.slane %v857_v55, 4  ;;  %v868_v62 = vperm.slane %v864_v57, %v2039_v24 }
 0x301   : > { %v870_v63 = vsel %vm555_vm1, %v869_v58, %v850_v59  ;;  %v1194_v53 = vsel %vm1047_vm3, %v1189_v52, 0 }
 0x302   : > { %v874_v0 = vperm.slane %v870_v63, %v2039_v24  ;;  %v878_v2 = vsel %vm555_vm1, %v863_v60, %v877_v61  ;;  %v889_v3 = vrot.slane %v868_v62, 4  ;;  %v875_v4 = vrot.slane %v863_v60, 4 }
 0x303   : > { %v886_v5 = vperm.slane %v878_v2, %v2050_v38 }
 0x304   : > { %v890_v6 = vsel %vm555_vm1, %v874_v0, %v889_v3  ;;  %v876_v8 = vsel %vm555_vm1, %v875_v4, %v857_v55  ;;  %v887_v9 = vrot.slane %v874_v0, 4 }
 0x305   : > { %v898_v10 = vperm.slane %v890_v6, %v2050_v38  ;;  %v905_v11 = vrot.slane %v886_v5, 4  ;;  %v882_v12 = vperm.slane %v876_v8, %v2050_v38 }
 0x306   : > { %v888_v15 = vsel %vm555_vm1, %v887_v9, %v868_v62 }
 0x307   : > { %v906_v24 = vsel %vm555_vm1, %v898_v10, %v905_v11  ;;  %v894_v16 = vperm.slane %v888_v15, %v2050_v38  ;;  %v901_v17 = vrot.slane %v882_v12, 4  ;;  %v903_v18 = vrot.slane %v898_v10, 4  ;;  %v1551_v10 = vld [vmem:[%s2272_s7] ss:$0 sm:$0xff] }
 0x308   : > { %v1043_v19 = vpack.c.bf16 %v906_v24, %v906_v24 }
 0x309   : > { %v902_v20 = vsel %vm555_vm1, %v894_v16, %v901_v17  ;;  %v904_v21 = vsel %vm555_vm1, %v903_v18, %v886_v5  ;;  %v899_v22 = vrot.slane %v894_v16, 4 }
 0x30a   : > { %v1106_v25 = vsel %vm1047_vm3, %v1043_v19, 0  ;;  %v1041_v26 = vpack.c.bf16 %v902_v20, %v902_v20  ;;  %v1042_v27 = vpack.c.bf16 %v904_v21, %v904_v21  ;;  %v1815_v19 = vmov 32.0  }
 0x30b   : > { %1115 = vmatpush.bf16.msra.mxu1 %v1106_v25  ;;  %v900_v28 = vsel %vm555_vm1, %v899_v22, %v882_v12 }
 0x30c   : > { %v1068_v29 = vsel %vm1047_vm3, %v1041_v26, 0  ;;  %v1087_v30 = vsel %vm1047_vm3, %v1042_v27, 0  ;;  %v1040_v38 = vpack.c.bf16 %v900_v28, %v900_v28 }
 0x30d   : > { %1077 = vmatpush.bf16.msrb.mxu3 %v1068_v29  ;;  %1096 = vmatpush.bf16.msra.mxu0 %v1087_v30 }
 0x30e   : > { %v1049_v31 = vsel %vm1047_vm3, %v1040_v38, 0 }
 0x30f   : > { %1058 = vmatpush.bf16.msrb.mxu2 %v1049_v31  ;;  %1203 = vmatpush.bf16.msrb.mxu1 %v1194_v53 }
 0x311   : > { %1180 = vmatpush.bf16.msrb.mxu0 %v1171_v49 }
 0x358   : > { %v1024_v32 = vpop.xlane.xlu1 %1023 }
 0x359   : > { %1562 = vrcp.f32 %v1024_v32 }
 0x35f   : > { %v1563_v33 = vpop.eup %1562 }
 0x360   : > { %v1021_v34 = vpop.xlane.xlu2 %1020  ;;  %v1034_v35 = vmul.f32 %v1563_v33, %v2142_v7 }
 0x361   : > { %v1018_v36 = vpop.xlane.xlu0 %1017  ;;  %1564 = vrcp.f32 %v1021_v34 }
 0x362   : > { %1566 = vrcp.f32 %v1018_v36  ;;  %v1038_v37 = vpack.c.bf16 %v1034_v35, %v1034_v35 }
 0x364   : > { %1434 = vmatmul.msk.bf16.vlgmr.msra.gmra.mxu0 %vm915_vm2, %v1038_v37 }
 0x367   : > { %v1565_v39 = vpop.eup %1564 }
 0x368   : > { %v1567_v40 = vpop.eup %1566  ;;  %v1033_v41 = vmul.f32 %v1565_v39, %v2146_v13  ;;  %v1125_v13 = vld [vmem:[#allocation10 + $0x4] sm:$0xf] }
 0x369   : > { %v1032_v42 = vmul.f32 %v1567_v40, %v2148_v14  ;;  %v1027_v43 = vpop.xlane.xlu0 %1026  ;;  %v1122_v14 = vld [vmem:[#allocation10] sm:$0xf]  ;;  %v1130_v50 = vsel %vm1047_vm3, %v1125_v13, 0 }
 0x36a   : > { %1568 = vrcp.f32 %v1027_v43  ;;  %v1037_v44 = vpack.c.bf16 %v1033_v41, %v1033_v41  ;;  %v1149_v51 = vsel %vm1047_vm3, %v1122_v14, 0  ;;  %1139 = vmatpush.bf16.msra.mxu2 %v1130_v50  ;;  %v1552_v41 = vld [vmem:[%s2273_s8] ss:$0 sm:$0xff] }
 0x36b   : > { %v1036_v45 = vpack.c.bf16 %v1032_v42, %v1032_v42  ;;  %1158 = vmatpush.bf16.msra.mxu3 %v1149_v51  ;;  %1570 = vrcp.f32 %v1815_v19 }
 0x36c   : > { %1433 = vmatmul.msk.bf16.vlgmr.msrb.gmra.mxu3 %vm915_vm2, %v1037_v44  ;;  %v1553_v44 = vld [vmem:[%s2274_s9] ss:$0 sm:$0xff] }
 0x36d   : > { %1432 = vmatmul.msk.bf16.vlgmr.msrb.gmra.mxu2 %vm915_vm2, %v1036_v45 }
 0x370   : > { %v1569_v7 = vpop.eup %1568 }
 0x371   : > { %v1035_v46 = vmul.f32 %v1569_v7, %v2157_v23  ;;  %v1571_v20 = vpop.eup %1570 }
 0x372   : > { %v1220_v21 = vmul.f32 32.0, %v1571_v20  ;;  %vm1224_vm4 = vweird.f32 %v1571_v20 }
 0x373   : > { %v1039_v47 = vpack.c.bf16 %v1035_v46, %v1035_v46 }
 0x374   : > { %v1221_v22 = vsub.f32 1.0, %v1220_v21 }
 0x375   : > { %1435 = vmatmul.msk.bf16.vlgmr.msra.gmra.mxu1 %vm915_vm2, %v1039_v47 }
 0x376   : > { %v1222_v25 = vmul.f32 %v1571_v20, %v1221_v22 }
 0x378   : > { %v1223_v26 = vadd.f32 %v1571_v20, %v1222_v25 }
 0x37a   : > { %v1225_v27 = vsel %vm1224_vm4, %v1571_v20, %v1223_v26 }
 0x3e1   : > { %v1098_v23 = vpop.f32.mrf.mxu0 }
 0x3e2   : > { %v1164_v54 = vpack.c.bf16 %v1098_v23, %v1098_v23 }
 0x3e4   : > { %1438 = vmatmul.msk.bf16.vlgmr.msrb.gmra.mxu0 %vm915_vm2, %v1164_v54 }
 0x3e9   : > { %v1100_v55 = vpop.f32.mrf.mxu0 }
 0x3ef   : > { %v1079_v56 = vpop.f32.mrf.mxu3 }
 0x3f0   : > { %v1060_v57 = vpop.f32.mrf.mxu2  ;;  %v1123_v58 = vpack.c.bf16 %v1079_v56, %v1079_v56 }
 0x3f1   : > { %v1121_v59 = vpack.c.bf16 %v1060_v57, %v1060_v57 }
 0x3f2   : > { %v1117_v60 = vpop.f32.mrf.mxu1  ;;  %1436 = vmatmul.msk.bf16.vlgmr.msra.gmra.mxu2 %vm915_vm2, %v1123_v58 }
 0x3f3   : > { %v1187_v61 = vpack.c.bf16 %v1117_v60, %v1117_v60  ;;  %1437 = vmatmul.msk.bf16.vlgmr.msra.gmra.mxu3 %vm915_vm2, %v1121_v59 }
 0x3f5   : > { %1439 = vmatmul.msk.bf16.vlgmr.msrb.gmra.mxu1 %vm915_vm2, %v1187_v61 }
 0x3f7   : > { %v1081_v62 = vpop.f32.mrf.mxu3 }
 0x3f8   : > { %v1062_v63 = vpop.f32.mrf.mxu2 }
 0x3fa   : > { %v1119_v0 = vpop.f32.mrf.mxu1 }
 0x461   : > { %v1182_v2 = vpop.f32.mrf.mxu0 }
 0x469   : > { %v1184_v3 = vpop.f32.mrf.mxu0 }
 0x472   : > { %v1205_v4 = vpop.f32.mrf.mxu1 }
 0x475   : > { %v1141_v5 = vpop.f32.mrf.mxu2 }
 0x476   : > { %v1160_v6 = vpop.f32.mrf.mxu3 }
 0x477   : > { %v1161_v8 = vadd.f32 %v1160_v6, %v1141_v5 }
 0x479   : > { %v1186_v9 = vadd.f32 %v1182_v2, %v1161_v8 }
 0x47a   : > { %v1207_v11 = vpop.f32.mrf.mxu1 }
 0x47b   : > { %v1209_v12 = vadd.f32 %v1205_v4, %v1186_v9 }
 0x47d   : > { %v1143_v15 = vpop.f32.mrf.mxu2  ;;  %v1214_v24 = vadd.f32 %v1551_v10, %v1209_v12 }
 0x47e   : > { %v1162_v16 = vpop.f32.mrf.mxu3 }
 0x47f   : > { %v1215_v17 = vadd.f32 %v1214_v24, %v2027_v1 }
 0x481   : > { %v1216_v18 = vsel %vm490_vm0, %v1215_v17, 0.0 }
 0x482   : > { %1217 = vadd.xlane.f32.xlu2 %v1216_v18 }
 0x4f5   : > { %v1218_v28 = vpop.xlane.xlu2 %1217 }
 0x4f6   : > { %v1226_v29 = vmul.f32 %v1225_v27, %v1218_v28 }
 0x4f8   : > { %v1227_v30 = vsub.f32 %v1215_v17, %v1226_v29 }
 0x4fa   : > { %v1228_v38 = vmul.f32 %v1227_v30, %v1227_v30 }
 0x4fc   : > { %v1229_v31 = vsel %vm490_vm0, %v1228_v38, 0.0 }
 0x4fd   : > { %1230 = vadd.xlane.f32.xlu1 %v1229_v31 }
 0x570   : > { %v1231_v1 = vpop.xlane.xlu1 %1230 }
 0x571   : > { %v1232_v32 = vmul.f32 %v1231_v1, %v1225_v27 }
 0x573   : > { %v1233_v33 = vadd.f32 1e-05, %v1232_v32 }
 0x575   : > { %1572 = vrsqrt.f32 %v1233_v33  ;;  %vm1240_vm6 = vweird.f32 %v1233_v33 }
 0x57b   : > { %v1573_v34 = vpop.eup %1572 }
 0x57c   : > { %v1235_v35 = vmul.f32 %v1573_v34, %v1233_v33  ;;  %vm1241_vm5 = vweird.f32 %v1573_v34 }
 0x57d   : > { %vm1242_vm7 = vmor %vm1240_vm6, %vm1241_vm5 }
 0x57e   : > { %v1236_v36 = vmul.f32 %v1573_v34, %v1235_v35 }
 0x580   : > { %v1237_v37 = vmul.f32 0.5, %v1236_v36 }
 0x582   : > { %v1238_v39 = vsub.f32 1.5, %v1237_v37 }
 0x584   : > { %v1239_v40 = vmul.f32 %v1573_v34, %v1238_v39 }
 0x586   : > { %v1243_v42 = vsel %vm1242_vm7, %v1573_v34, %v1239_v40 }
 0x587   : > { %v1244_v43 = vmul.f32 %v1243_v42, %v1227_v30 }
 0x589   : > { %v1249_v45 = vmul.f32 %v1552_v41, %v1244_v43 }
 0x58b   : > { %v1254_v7 = vadd.f32 %v1553_v44, %v1249_v45 }
 0x58d   : > { %1255 = vst.msk [vmem:[%s464_s20] sm:$0xff] %vm490_vm0, %v1254_v7 }
 0x58e   : > { %1751 = shalt.err (!%p1748_p10)
}
 0x58f   : > { %1464 = dma.vmem_to_hbm [thread:$0]  (%p1951_p0), %s1270_s27, 128, %s1272_s19, %s1257_s25  }
 0x590 PF: > { %s2301_s15 = sld [smem:[#allocation17_spill]] }
 0x591   : > { %s2303_s29 = sld [smem:[#allocation19_spill]] }
 0x596   : > { %s1283_s6 = sand.u32 1, %s2301_s15  }
 0x597   : > { %p2304_p12 = scmp.ge.s32.totalorder %s2303_s29, 2  ;;  %s1284_s4 = scalar_lea.sflag [#allocation4], %s1283_s6 }
 0x599   : > { %p1484_p5 = pnand %p2304_p12, %p1957_p6 }
 0x59b   : > { %p1485_p11 = pneg %p1484_p5 }
 0x59d   : > { %1785 = dma.done.wait (%p1485_p11), %s1284_s4, 128  }
 0x59e   : > { %1787 = vsyncadd (%p1485_p11), %s1284_s4, 4294967168  ;;  %s2305_s16 = sld [smem:[#allocation20_spill]]  ;;  %s2308_s13 = smov %s1794_s14 }
 0x59f   : > { %s2306_s12 = sld [smem:[#allocation18_spill]] }
 0x5a0   : > { %s2307_s15 = sld [smem:[#allocation21_spill]] }
 0x5a4   : > { %p27_p2 = scmp.ge.s32.totalorder %s2305_s16, 4  }
 0x5a5   : > { %s2309_s14 = smov %s2306_s12 }
 0x5a6   :  { %29 = sbr.rel (!%p27_p2) target bundleno = 12 (0xc), region = 133 }
 0x5ab   :  { %1290 = vsyncpa [#allocation3], 1 }
 0x5ac   :  { %1292 = vsyncpa [#allocation3 + $0x1], 1 }
 0x5ad   :  { %1293 = vsyncpa [#allocation6], 1 }
 0x5ae   :  { %1295 = vsyncpa [#allocation6 + $0x1], 1 }
 0x5af   :  { %1296 = vsyncpa [#allocation9], 1 }
 0x5b0   :  { %1297 = vsyncpa [#allocation4], 1 }
 0x5b1   :  { %1299 = vsyncpa [#allocation4 + $0x1], 1 }

</bundles_post_ra>
